<compile_context>
chip_gen: v6e
topology: v6e:2x2x1
jax: 0.10.0
libtpu: 0.0.40
codegen_flags: <defaults>
</compile_context>

<pallas_src>
import functools

import jax
import jax.numpy as jnp
from jax.experimental import pallas as pl
from jax.experimental.pallas import tpu as pltpu


def critic_kernel(x_ref, p_ref, o_ref, *, hidden_dim, state_dim, inner, mxu_bf16):
    H, S = hidden_dim, state_dim
    bt = x_ref.shape[-1]
    n_chunks = bt // inner                 # wrapper guarantees bt % inner == 0

    # Static carve-outs from the packed parameter slab (zero runtime cost).
    w1t = p_ref[0:H, 0:S]                  # (H, S)   layer-1 weight (out, in)
    w2t = p_ref[H:2 * H, 0:H]              # (H, H)   layer-2 weight (out, in)
    misc = p_ref[2 * H:3 * H, :]           # (H, 128) biases + layer-3 weight
    b1 = misc[:, 0:1]                      # (H, 1)
    b2 = misc[:, 1:2]                      # (H, 1)
    w3c = misc[:, 2:3]                     # (H, 1)   layer-3 weight column
    b3 = misc[0:1, 3:4]                    # (1, 1)   layer-3 bias

    # Cast the (reused) MXU weight operand once per block, outside the chunk loop.
    w2_mxu = w2t.astype(jnp.bfloat16) if mxu_bf16 else w2t

    # Sub-chunk loop: statically unrolled (n_chunks <= 4 by construction); all
    # slice starts are 128-aligned Python constants -> plain unmasked vld/vst.
    for c in range(n_chunks):
        start = c * inner
        xc = x_ref[:, start:start + inner]          # (S, inner), batch on lanes

        # Layer 1: K = state_dim = 2 -> pure f32 VPU broadcast multiply-adds
        # (an (H,2)@(2,B) MXU op would waste >98% of the systolic array).
        h1 = b1
        for s in range(S):                           # unrolled at trace time
            h1 = h1 + w1t[:, s:s + 1] * xc[s:s + 1, :]
        h1 = jnp.maximum(h1, 0.0)                    # (H, inner)

        # Layer 2: the only real matmul -> MXU, bf16 operands, f32 accumulation.
        h1_mxu = h1.astype(jnp.bfloat16) if mxu_bf16 else h1
        h2 = jnp.dot(w2_mxu, h1_mxu, preferred_element_type=jnp.float32) + b2
        h2 = jnp.maximum(h2, 0.0)                    # (H, inner), f32

        # Layer 3: N = 1 -> f32 VPU multiply + cross-sublane reduce (XLU slot),
        # lane-dense (1, inner) output chunk.
        out = jnp.sum(h2 * w3c, axis=0, keepdims=True) + b3
        o_ref[:, start:start + inner] = out.astype(o_ref.dtype)


def pack_params(params, lanes=128):
    """Pack (w1,b1,w2,b2,w3,b3) into one (3*H, lanes) f32 slab.

    Weights are stored in (out, in) orientation (PyTorch layout) so the kernel
    computes the transposed forward pass directly.
    """
    w1, b1, w2, b2, w3, b3 = params        # w1:(S,H) b1:(1,H) w2:(H,H) b2:(1,H) w3:(H,1) b3:(1,1)
    S, H = w1.shape
    assert max(S, H, 4) <= lanes, "hidden/state dims must fit in one lane row"
    assert H % 8 == 0, "hidden_dim must be a multiple of 8 for clean slab tiling"
    slab = jnp.zeros((3 * H, lanes), jnp.float32)
    slab = slab.at[0:H, 0:S].set(w1.T)             # layer-1 weight (H, S)
    slab = slab.at[H:2 * H, 0:H].set(w2.T)         # layer-2 weight (H, H)
    slab = slab.at[2 * H:3 * H, 0:1].set(b1.T)     # layer-1 bias   (H, 1)
    slab = slab.at[2 * H:3 * H, 1:2].set(b2.T)     # layer-2 bias   (H, 1)
    slab = slab.at[2 * H:3 * H, 2:3].set(w3)       # layer-3 weight (H, 1)
    slab = slab.at[2 * H, 3].set(b3[0, 0])         # layer-3 bias   scalar
    return slab


def critic_forward_t(xT, params, *, block_b=2048, inner=512, mxu_bf16=True):
    """Pre-transposed entry point.  xT: (state_dim, B) f32 -> (1, B) f32.

    No host-side transpose or pad: x stays (S, B), the grid is cdiv(B, bt), and
    the overhang of the last block (if any) is discarded by Pallas.
    """
    S, B = xT.shape
    w1, _, w2, _, _, _ = params
    H = w2.shape[0]
    assert w1.shape[0] == S

    slab = pack_params(params)             # (3H, 128) single-DMA parameter slab

    if B <= inner:
        # One program, one chunk; block dims equal the full array dims so the
        # (8,128) divisibility rule is trivially satisfied even for tiny B.
        bt, inner_k = B, B
        grid = (1,)
    else:
        assert inner % 128 == 0, "inner chunk must be lane-aligned"
        max_chunks = max(1, block_b // inner)
        n_tot = pl.cdiv(B, inner)
        # Cap chunks-per-block so the "parallel" batch grid has >= 2 steps
        # (keeps both v7x TensorCores busy); costs one extra ~0.35 us step at most.
        chunks_per_block = max(1, min(max_chunks, pl.cdiv(n_tot, 2)))
        bt, inner_k = chunks_per_block * inner, inner
        grid = (pl.cdiv(B, bt),)

    kernel = functools.partial(critic_kernel, hidden_dim=H, state_dim=S,
                               inner=inner_k, mxu_bf16=mxu_bf16)
    outT = pl.pallas_call(
        kernel,
        out_shape=jax.ShapeDtypeStruct((1, B), jnp.float32),
        grid_spec=pltpu.PrefetchScalarGridSpec(
            num_scalar_prefetch=0,
            grid=grid,
            in_specs=[
                pl.BlockSpec((S, bt), lambda b: (0, b)),        # x tile (lane-dense)
                pl.BlockSpec(slab.shape, lambda b: (0, 0)),     # params: VMEM-resident
            ],
            out_specs=pl.BlockSpec((1, bt), lambda b: (0, b)),  # lane-dense output
        ),
        compiler_params=pltpu.CompilerParams(
            dimension_semantics=("parallel",)),
    )(xT, slab)
    return outT                              # (1, B)


def critic_forward(x, params, *, block_b=2048, inner=512, mxu_bf16=True):
    """PyTorch-layout entry point.  x: (B, state_dim) f32 -> (B, 1) f32.

    Pays one extra HBM pass for the transpose; keep activations (S, B) upstream
    and call critic_forward_t to avoid it.
    """
    B, _ = x.shape
    xT = x.astype(jnp.float32).T
    outT = critic_forward_t(xT, params, block_b=block_b, inner=inner,
                            mxu_bf16=mxu_bf16)
    return outT.reshape(B, 1)


def init_params(key, state_dim, hidden_dim):
    # Deterministic PyTorch-style uniform(-1/sqrt(fan_in), 1/sqrt(fan_in)) init.
    ks = jax.random.split(key, 6)

    def linear(kw, kb, fan_in, fan_out):
        bound = 1.0 / jnp.sqrt(jnp.float32(fan_in))
        w = jax.random.uniform(kw, (fan_in, fan_out), jnp.float32, -bound, bound)
        b = jax.random.uniform(kb, (1, fan_out), jnp.float32, -bound, bound)
        return w, b

    w1, b1 = linear(ks[0], ks[1], state_dim, hidden_dim)
    w2, b2 = linear(ks[2], ks[3], hidden_dim, hidden_dim)
    w3, b3 = linear(ks[4], ks[5], hidden_dim, 1)
    return (w1, b1, w2, b2, w3, b3)


def critic_ref(x, params, *, mxu_bf16=False):
    w1, b1, w2, b2, w3, b3 = params
    h1 = jnp.maximum(x @ w1 + b1, 0.0)
    if mxu_bf16:
        h2 = jnp.dot(h1.astype(jnp.bfloat16), w2.astype(jnp.bfloat16),
                     preferred_element_type=jnp.float32) + b2
    else:
        h2 = h1 @ w2 + b2
    h2 = jnp.maximum(h2, 0.0)
    return h2 @ w3 + b3


if __name__ == "__main__":
    state_dim = 2    # VanDeVusseEnv observation_space.shape[0]
    hidden_dim = 32

    key = jax.random.PRNGKey(0)
    kp, kx1, kx2 = jax.random.split(key, 3)
    params = init_params(kp, state_dim, hidden_dim)

    # Case 1: tiny batch, PyTorch (B, S) layout, full f32 path -> tight check
    # against the reference (exactly the original module's semantics).
    batch = 8
    x_small = jax.random.uniform(kx1, (batch, state_dim), jnp.float32, 0.0, 10.0)
    out_small = jax.block_until_ready(critic_forward(x_small, params, mxu_bf16=False))
    ref_small = critic_ref(x_small, params)
    assert out_small.shape == (batch, 1)
    assert jnp.allclose(out_small, ref_small, atol=1e-4, rtol=1e-4), (
        f"f32 mismatch: max abs err = {jnp.max(jnp.abs(out_small - ref_small))}")

    # Case 2: larger batch with pre-transposed (S, B) activations (no host-side
    # transpose/pad), bf16 MXU operands, 2-step "parallel" grid (both v7x TCs),
    # two 512-lane sub-chunks per step.  Checked against a reference using the
    # same bf16-at-the-matmul cast.
    big_b = 2048
    xT_big = jax.random.uniform(kx2, (state_dim, big_b), jnp.float32, 0.0, 10.0)
    outT_big = jax.block_until_ready(critic_forward_t(xT_big, params, mxu_bf16=True))
    ref_big = critic_ref(xT_big.T, params, mxu_bf16=True).T   # (1, B)
    assert outT_big.shape == (1, big_b)
    assert jnp.allclose(outT_big, ref_big, atol=2e-3, rtol=2e-3), (
        f"bf16 mismatch: max abs err = {jnp.max(jnp.abs(outT_big - ref_big))}")

    print("KERNEL_OK")
</pallas_src>

<mosaic_0001>
module attributes {stable_mosaic.version = 11 : i64} {
  func.func @critic_kernel(%arg0: i32, %arg1: memref<2x8xf32, #tpu.memory_space<vmem>>, %arg2: memref<96x128xf32, #tpu.memory_space<vmem>>, %arg3: memref<1x8xf32, #tpu.memory_space<vmem>>) attributes {dimension_semantics = [#tpu.dimension_semantics<parallel>], iteration_bounds = array<i64: 1>, scalar_prefetch = 0 : i64, scratch_operands = 0 : i64, tpu.core_type = #tpu.core_type<tc>, window_params = [{transform_indices = @transform_0, window_bounds = array<i64: 2, 8>}, {pipeline_mode = #tpu.pipeline_mode<synchronous>, transform_indices = @transform_1, window_bounds = array<i64: 96, 128>}, {transform_indices = @transform_2, window_bounds = array<i64: 1, 8>}]} {
    %c0 = arith.constant 0 : index
    %c0_0 = arith.constant 0 : index
    %0 = vector.load %arg2[%c0, %c0_0] : memref<96x128xf32, #tpu.memory_space<vmem>>, vector<32x2xf32>
    %c32 = arith.constant 32 : index
    %c0_1 = arith.constant 0 : index
    %1 = vector.load %arg2[%c32, %c0_1] : memref<96x128xf32, #tpu.memory_space<vmem>>, vector<32x32xf32>
    %c64 = arith.constant 64 : index
    %c0_2 = arith.constant 0 : index
    %2 = vector.load %arg2[%c64, %c0_2] : memref<96x128xf32, #tpu.memory_space<vmem>>, vector<32x128xf32>
    %3 = vector.extract_strided_slice %2 {offsets = [0, 0], sizes = [32, 1], strides = [1, 1]} : vector<32x128xf32> to vector<32x1xf32>
    %4 = vector.extract_strided_slice %2 {offsets = [0, 1], sizes = [32, 1], strides = [1, 1]} : vector<32x128xf32> to vector<32x1xf32>
    %5 = vector.extract_strided_slice %2 {offsets = [0, 2], sizes = [32, 1], strides = [1, 1]} : vector<32x128xf32> to vector<32x1xf32>
    %6 = vector.extract_strided_slice %2 {offsets = [0, 3], sizes = [1, 1], strides = [1, 1]} : vector<32x128xf32> to vector<1x1xf32>
    %c0_3 = arith.constant 0 : index
    %c0_4 = arith.constant 0 : index
    %7 = vector.load %arg1[%c0_3, %c0_4] : memref<2x8xf32, #tpu.memory_space<vmem>>, vector<2x8xf32>
    %8 = vector.extract_strided_slice %0 {offsets = [0, 0], sizes = [32, 1], strides = [1, 1]} : vector<32x2xf32> to vector<32x1xf32>
    %9 = vector.extract_strided_slice %7 {offsets = [0, 0], sizes = [1, 8], strides = [1, 1]} : vector<2x8xf32> to vector<1x8xf32>
    %10 = vector.broadcast %8 : vector<32x1xf32> to vector<32x8xf32>
    %11 = vector.broadcast %9 : vector<1x8xf32> to vector<32x8xf32>
    %12 = arith.mulf %10, %11 : vector<32x8xf32>
    %13 = vector.broadcast %3 : vector<32x1xf32> to vector<32x8xf32>
    %14 = arith.addf %13, %12 : vector<32x8xf32>
    %15 = vector.extract_strided_slice %0 {offsets = [0, 1], sizes = [32, 1], strides = [1, 1]} : vector<32x2xf32> to vector<32x1xf32>
    %16 = vector.extract_strided_slice %7 {offsets = [1, 0], sizes = [1, 8], strides = [1, 1]} : vector<2x8xf32> to vector<1x8xf32>
    %17 = vector.broadcast %15 : vector<32x1xf32> to vector<32x8xf32>
    %18 = vector.broadcast %16 : vector<1x8xf32> to vector<32x8xf32>
    %19 = arith.mulf %17, %18 : vector<32x8xf32>
    %20 = arith.addf %14, %19 : vector<32x8xf32>
    %cst = arith.constant 0.000000e+00 : f32
    %21 = vector.broadcast %cst : f32 to vector<32x8xf32>
    %22 = arith.maximumf %20, %21 : vector<32x8xf32>
    %cst_5 = arith.constant dense<0.000000e+00> : vector<32x8xf32>
    %23 = tpu.matmul %1, %22, %cst_5 {dimension_numbers = #tpu.dot_dimension_numbers<[1], [0], [0], [1], [0, 0, 1, 1], [], []>} : vector<32x32xf32>, vector<32x8xf32>, vector<32x8xf32> -> vector<32x8xf32>
    %24 = vector.broadcast %4 : vector<32x1xf32> to vector<32x8xf32>
    %25 = arith.addf %23, %24 : vector<32x8xf32>
    %cst_6 = arith.constant 0.000000e+00 : f32
    %26 = vector.broadcast %cst_6 : f32 to vector<32x8xf32>
    %27 = arith.maximumf %25, %26 : vector<32x8xf32>
    %28 = vector.broadcast %5 : vector<32x1xf32> to vector<32x8xf32>
    %29 = arith.mulf %27, %28 : vector<32x8xf32>
    %cst_7 = arith.constant dense<0.000000e+00> : vector<8xf32>
    %30 = vector.multi_reduction <add>, %29, %cst_7 [0] : vector<32x8xf32> to vector<8xf32>
    %31 = vector.shape_cast %30 : vector<8xf32> to vector<1x8xf32>
    %32 = vector.broadcast %6 : vector<1x1xf32> to vector<1x8xf32>
    %33 = arith.addf %31, %32 : vector<1x8xf32>
    %c0_8 = arith.constant 0 : index
    %c0_9 = arith.constant 0 : index
    %34 = vector.load %arg3[%c0_8, %c0_9] : memref<1x8xf32, #tpu.memory_space<vmem>>, vector<1x8xf32>
    tpu.vector_store %arg3[%c0_8, %c0_9], %33 {strides = array<i32>} : memref<1x8xf32, #tpu.memory_space<vmem>>, vector<1x8xf32>,
    return
  }
  func.func @transform_0(%arg0: i32) -> (i32, i32) {
    %c0_i32 = arith.constant 0 : i32
    %c0_i32_0 = arith.constant 0 : i32
    return %c0_i32, %arg0 : i32, i32
  }
  func.func @transform_1(%arg0: i32) -> (i32, i32) {
    %c0_i32 = arith.constant 0 : i32
    %c0_i32_0 = arith.constant 0 : i32
    %c0_i32_1 = arith.constant 0 : i32
    return %c0_i32, %c0_i32_0 : i32, i32
  }
  func.func @transform_2(%arg0: i32) -> (i32, i32) {
    %c0_i32 = arith.constant 0 : i32
    %c0_i32_0 = arith.constant 0 : i32
    return %c0_i32, %arg0 : i32, i32
  }
}

</mosaic_0001>

<bundles_post_ra>
// kernel: tpu_custom_call.1
= control target key start
LH: loop header
LB: loop body
LE: loop exit
PB: predicated region body
PF: predicated region fallthrough
CT: control target
= control target key end

     0   :  { %7 = vsyncpa [#allocation3], 0  ;;  %s465_s0 = inlined_call_operand.hbm [shape: f32[2,8], index: 0, kind: input, shape index: {}]   ;;  %s466_s1 = inlined_call_operand.hbm [shape: f32[96,128], index: 1, kind: input, shape index: {}]   ;;  %s467_s2 = inlined_call_operand.hbm [shape: f32[1,8], index: 2, kind: output, shape index: {}]  }
   0x1   :  { %8 = vsyncpa [#allocation6], 0 }
   0x2   :  { %9 = vsyncpa [#allocation4], 0  ;;  %s428_s9 = smov [#allocation2]   ;;  %s429_s11 = smov [#allocation5]  }
   0x3   :  { %s16_s10 = sshll.u32 %s428_s9, 4  ;;  %s25_s12 = sshll.u32 %s429_s11, 4  ;;  %s17_s10 = int_to_ptr.vmem [resolvable:$true] %s16_s10  ;;  %s26_s12 = int_to_ptr.vmem [resolvable:$true] %s25_s12 }
   0x4   :  { %s370_s13 = scalar_lea.vmem %s17_s10, 32  ;;  %p375_p1 = scmp.lt.s32.totalorder %s17_s10, %s17_s10 }
   0x5   :  { %p371_p0 = scmp.ne.s32.totalorder %s17_s10, %s370_s13  ;;  %p376_p2 = scmp.lt.s32.totalorder %s370_s13, %s370_s13 }
   0x7   :  { %p377_p3 = por %p376_p2, %p375_p1 }
   0x9   :  { %p378_p4 = pnand %p377_p3, %p371_p0 }
   0xb   :  { %381 = shalt.err (!%p378_p4)
}
   0xc   :  { %19 = dma.hbm_to_vmem [thread:$0]  %s465_s0, 32, %s17_s10, [#allocation3]  }
   0xd   :  { %s390_s16 = scalar_lea.vmem %s26_s12, 1536  ;;  %p395_p6 = scmp.lt.s32.totalorder %s26_s12, %s26_s12 }
   0xe   :  { %p391_p5 = scmp.ne.s32.totalorder %s26_s12, %s390_s16  ;;  %p396_p7 = scmp.lt.s32.totalorder %s390_s16, %s390_s16 }
  0x10   :  { %p397_p8 = por %p396_p7, %p395_p6 }
  0x12   :  { %p398_p9 = pnand %p397_p8, %p391_p5 }
  0x14   :  { %401 = shalt.err (!%p398_p9)
}
  0x15   :  { %s430_s17 = smov 128   ;;  %s431_s18 = smov 8  }
  0x16   :  { %31 = dma.hbm_to_vmem [thread:$0]  %s466_s1, 1536, %s26_s12, [#allocation6], %s430_s17, %s430_s17, %s431_s18  }
  0x17   :  { %422 = dma.done.wait [#allocation3], 32  }
  0x18   :  { %423 = vsyncadd [#allocation3], 4294967264 }
  0x19   :  { %424 = dma.done.wait [#allocation6], 1536  }
  0x1a   :  { %425 = vsyncadd [#allocation6], 4294965760  ;;  %v432_v0 = vmov 0   ;;  %v49_v1 = vld [vmem:[#allocation5 + $0x58] sm:$0xff]  ;;  %v40_v3 = vld [vmem:[#allocation5 + $0x10] sm:$0xff]  ;;  %v433_v4 = vmov 1   ;;  %v71_v14 = vlaneseq }
  0x1b   :  { %354 = vset.pattern.permute.xlu1 %v432_v0  ;;  %353 = vset.pattern.permute.xlu0 %v432_v0  ;;  %v41_v2 = vld [vmem:[#allocation5 + $0x18] sm:$0xff]  ;;  %v39_v5 = vld [vmem:[#allocation5 + $0x8] sm:$0xff]  ;;  %v48_v6 = vld [vmem:[#allocation5 + $0x50] sm:$0xff]  ;;  %vm151_vm0 = vcmask 261120   ;;  %v434_v12 = vmov 2   ;;  %v435_v13 = vmov 3  }
  0x1c   :  { %96 = vperm.xlu1 %354, %v49_v1   ;;  %68 = vperm.xlu0 %353, %v41_v2   ;;  %v38_v7 = vld [vmem:[#allocation5] sm:$0xff]  ;;  %v47_v8 = vld [vmem:[#allocation5 + $0x48] sm:$0xff]  ;;  %v44_v11 = vld [vmem:[#allocation5 + $0x30] sm:$0xff]  ;;  %v72_v15 = vshrl.u32 %v71_v14, 7  ;;  %vm273_vm1 = vcmask 64512   ;;  %s436_s0 = smov [#allocation7]  }
  0x1d   :  { %v46_v9 = vld [vmem:[#allocation5 + $0x40] sm:$0xff]  ;;  %333 = vmatprep.mubr.msk.f32.mxu1 %vm151_vm0, %v44_v11  ;;  %v50_v17 = vld [vmem:[#allocation2] sm:$0x3]  ;;  %v43_v53 = vld [vmem:[#allocation5 + $0x28] sm:$0xff]  ;;  %s300_s1 = sshll.u32 %s436_s0, 4  ;;  %vm292_vm2 = vcmask 57344   ;;  %s301_s1 = int_to_ptr.vmem [resolvable:$true] %s300_s1 }
  0x1e   :  { %v42_v10 = vld [vmem:[#allocation5 + $0x20] sm:$0xff]  ;;  %v73_v16 = vsub.s32 0, %v72_v15  ;;  %v121_v19 = vsub.s32 1, %v72_v15  ;;  %v45_v54 = vld [vmem:[#allocation5 + $0x38] sm:$0xff]  ;;  %s402_s21 = scalar_lea.vmem %s301_s1, 16  ;;  %s406_s22 = scalar_lea.vmem %s301_s1, 32 }
  0x1f   :  { %330 = vmatprep.mubr.msk.f32.mxu0 %vm151_vm0, %v42_v10  ;;  %p403_p10 = scmp.ne.s32.totalorder %s301_s1, %s402_s21  ;;  %p407_p11 = scmp.lt.s32.totalorder %s301_s1, %s301_s1 }
  0x20   :  { %355 = vset.pattern.permute.xlu1 %v433_v4  ;;  %63 = vperm.xlu0 %353, %v40_v3   ;;  %v74_v18 = vrot.slane %v50_v17, %v73_v16  ;;  %v122_v23 = vrot.slane %v50_v17, %v121_v19  ;;  %p408_p12 = scmp.lt.s32.totalorder %s406_s22, %s402_s21 }
  0x21   :  { %116 = vperm.xlu1 %355, %v41_v2  }
  0x22   :  { %p409_p13 = por %p408_p12, %p407_p11 }
  0x24   :  { %58 = vperm.xlu0 %353, %v39_v5   ;;  %p410_p0 = pnand %p409_p13, %p403_p10 }
  0x25   :  { %356 = vset.pattern.permute.xlu1 %v432_v0 }
  0x26   :  { %91 = vperm.xlu1 %356, %v48_v6  }
  0x28   :  { %357 = vset.pattern.permute.xlu0 %v433_v4 }
  0x29   :  { %112 = vperm.xlu0 %357, %v40_v3  }
  0x2a   :  { %53 = vperm.xlu1 %356, %v38_v7  }
  0x2d   :  { %108 = vperm.xlu0 %357, %v39_v5  }
  0x2e   :  { %86 = vperm.xlu1 %356, %v47_v8  }
  0x31   :  { %104 = vperm.xlu0 %357, %v38_v7  }
  0x32   :  { %81 = vperm.xlu1 %356, %v46_v9  }
  0x35   :  { %140 = vperm.xlu0 %357, %v47_v8  }
  0x36   :  { %358 = vset.pattern.permute.xlu1 %v433_v4 }
  0x37   :  { %136 = vperm.xlu1 %358, %v46_v9  }
  0x39   :  { %148 = vperm.xlu0 %357, %v49_v1  }
  0x3b   :  { %144 = vperm.xlu1 %358, %v48_v6  }
  0x3d   :  { %360 = vset.pattern.permute.xlu0 %v434_v12 }
  0x3e   :  { %258 = vperm.xlu0 %360, %v47_v8  }
  0x3f   :  { %359 = vset.pattern.permute.xlu1 %v434_v12 }
  0x40   :  { %254 = vperm.xlu1 %359, %v46_v9  }
  0x42   :  { %361 = vset.pattern.permute.xlu0 %v435_v13 }
  0x43   :  { %288 = vperm.xlu0 %361, %v46_v9  }
  0x44   :  { %262 = vperm.xlu1 %359, %v48_v6  }
  0x48   :  { %266 = vperm.xlu1 %359, %v49_v1  }
  0x97   :  { %v97_v20 = vpop.permute.xlu1 %96  ;;  %v69_v21 = vpop.permute.xlu0 %68 }
  0x98   :  { %v78_v22 = vmul.f32 %v74_v18, %v69_v21 }
  0x9a   :  { %v102_v26 = vadd.f32 %v97_v20, %v78_v22 }
  0x9b   :  { %v64_v24 = vpop.permute.xlu0 %63 }
  0x9c   :  { %v117_v25 = vpop.permute.xlu1 %116  ;;  %v77_v32 = vmul.f32 %v74_v18, %v64_v24 }
  0x9d   :  { %v126_v27 = vmul.f32 %v122_v23, %v117_v25 }
  0x9f   :  { %v130_v28 = vadd.f32 %v126_v27, %v102_v26  ;;  %v59_v29 = vpop.permute.xlu0 %58 }
  0xa0   :  { %v76_v38 = vmul.f32 %v74_v18, %v59_v29 }
  0xa1   :  { %v134_v30 = vmax.f32 %v130_v28, 0.0  ;;  %v92_v31 = vpop.permute.xlu1 %91 }
  0xa2   :  { %v101_v34 = vadd.f32 %v92_v31, %v77_v32 }
  0xa3   :  { %322 = vmatprep.subr.mxu0 %v134_v30  ;;  %336 = vmatprep.subr.mxu1 %v134_v30 }
  0xa4   :  { %323 = vmatpush3.msra.mxu0 %v134_v30  ;;  %340 = vmatpush3.msra.mxu1 %v134_v30  ;;  %v113_v33 = vpop.permute.xlu0 %112 }
  0xa5   :  { %v125_v35 = vmul.f32 %v122_v23, %v113_v33  ;;  %v54_v36 = vpop.permute.xlu1 %53 }
  0xa6   :  { %v75_v44 = vmul.f32 %v74_v18, %v54_v36 }
  0xa7   :  { %v129_v37 = vadd.f32 %v125_v35, %v101_v34 }
  0xa8   :  { %v109_v39 = vpop.permute.xlu0 %108 }
  0xa9   :  { %v133_v40 = vmax.f32 %v129_v37, 0.0  ;;  %v124_v41 = vmul.f32 %v122_v23, %v109_v39  ;;  %v87_v42 = vpop.permute.xlu1 %86 }
  0xaa   :  { %v100_v43 = vadd.f32 %v87_v42, %v76_v38 }
  0xab   :  { %324 = vmatprep.subr.mxu0 %v133_v40  ;;  %337 = vmatprep.subr.mxu1 %v133_v40 }
  0xac   :  { %v128_v45 = vadd.f32 %v124_v41, %v100_v43  ;;  %325 = vmatpush3.msra.mxu0 %v133_v40  ;;  %341 = vmatpush3.msra.mxu1 %v133_v40  ;;  %v105_v46 = vpop.permute.xlu0 %104 }
  0xad   :  { %v123_v47 = vmul.f32 %v122_v23, %v105_v46  ;;  %v82_v48 = vpop.permute.xlu1 %81 }
  0xae   :  { %v132_v49 = vmax.f32 %v128_v45, 0.0  ;;  %v99_v50 = vadd.f32 %v82_v48, %v75_v44 }
  0xb0   :  { %v127_v51 = vadd.f32 %v123_v47, %v99_v50  ;;  %326 = vmatprep.subr.mxu0 %v132_v49  ;;  %338 = vmatprep.subr.mxu1 %v132_v49  ;;  %v141_v57 = vpop.permute.xlu0 %140 }
  0xb1   :  { %327 = vmatpush3.msra.mxu0 %v132_v49  ;;  %342 = vmatpush3.msra.mxu1 %v132_v49 }
  0xb2   :  { %v131_v52 = vmax.f32 %v127_v51, 0.0  ;;  %v137_v55 = vpop.permute.xlu1 %136 }
  0xb4   :  { %328 = vmatprep.subr.mxu0 %v131_v52  ;;  %339 = vmatprep.subr.mxu1 %v131_v52  ;;  %v149_v59 = vpop.permute.xlu0 %148 }
  0xb5   :  { %329 = vmatpush3.msra.mxu0 %v131_v52  ;;  %343 = vmatpush3.msra.mxu1 %v131_v52 }
  0xb6   :  { %331 = vmatmul.mubr.msk.f32.vlgmr.msra.gmra.mxu0 %vm151_vm0, %v43_v53  ;;  %334 = vmatmul.mubr.msk.f32.vlgmr.msra.gmra.mxu1 %vm151_vm0, %v45_v54  ;;  %v145_v56 = vpop.permute.xlu1 %144 }
  0xb9   :  { %v259_v1 = vpop.permute.xlu0 %258 }
  0xbb   :  { %v255_v58 = vpop.permute.xlu1 %254 }
  0xbe   :  { %v289_v27 = vpop.permute.xlu0 %288 }
  0xbf   :  { %v263_v62 = vpop.permute.xlu1 %262 }
  0xc3   :  { %v267_v13 = vpop.permute.xlu1 %266 }
 0x176   :  { %v332_v60 = vpop.f32.mrf.mxu0  ;;  %v335_v61 = vpop.f32.mrf.mxu1 }
 0x177   :  { %v236_v63 = vadd.f32 %v332_v60, %v141_v57  ;;  %v246_v0 = vadd.f32 %v335_v61, %v149_v59 }
 0x178   :  { %v230_v2 = vpop.f32.mrf.mxu0  ;;  %v240_v3 = vpop.f32.mrf.mxu1 }
 0x179   :  { %v250_v4 = vmax.f32 %v236_v63, 0.0  ;;  %v231_v5 = vadd.f32 %v230_v2, %v137_v55  ;;  %v241_v6 = vadd.f32 %v240_v3, %v145_v56  ;;  %v252_v7 = vmax.f32 %v246_v0, 0.0 }
 0x17b   :  { %v249_v8 = vmax.f32 %v231_v5, 0.0  ;;  %v251_v9 = vmax.f32 %v241_v6, 0.0  ;;  %v270_v10 = vmul.f32 %v259_v1, %v250_v4  ;;  %v272_v14 = vmul.f32 %v267_v13, %v252_v7 }
 0x17d   :  { %v269_v11 = vmul.f32 %v255_v58, %v249_v8  ;;  %v271_v12 = vmul.f32 %v263_v62, %v251_v9  ;;  %v275_v16 = vsel %vm273_vm1, %v270_v10, 0.0  ;;  %v279_v20 = vsel %vm273_vm1, %v272_v14, 0.0 }
 0x17f   :  { %v274_v15 = vsel %vm273_vm1, %v269_v11, 0.0  ;;  %v277_v18 = vsel %vm273_vm1, %v271_v12, 0.0 }
 0x180   :  { %v276_v17 = vadd.f32 %v275_v16, %v274_v15 }
 0x182   :  { %v278_v19 = vadd.f32 %v277_v18, %v276_v17 }
 0x184   :  { %v280_v21 = vadd.f32 %v279_v20, %v278_v19 }
 0x186   :  { %v281_v22 = vrot.slane %v280_v21, 4 }
 0x188   :  { %v282_v23 = vadd.f32 %v281_v22, %v280_v21 }
 0x18a   :  { %v283_v24 = vrot.slane %v282_v23, 2 }
 0x18c   :  { %v284_v25 = vadd.f32 %v283_v24, %v282_v23 }
 0x18e   :  { %v285_v26 = vrot.slane %v284_v25, 1 }
 0x190   :  { %v286_v28 = vadd.f32 %v285_v26, %v284_v25 }
 0x192   :  { %v291_v29 = vadd.f32 %v289_v27, %v286_v28 }
 0x194   :  { %293 = vst.msk [vmem:[#allocation7] sm:$0x1] %vm292_vm2, %v291_v29 }
 0x195   :  { %413 = shalt.err (!%p410_p0)
}
 0x196   :  { %303 = dma.vmem_to_hbm [thread:$0]  %s301_s1, 16, %s467_s2, [#allocation4]  }
 0x197   :  { %426 = dma.done.wait [#allocation4], 16  }
 0x198   :  { %427 = vsyncadd [#allocation4], 4294967280 }
 0x199   :  { %307 = vsyncpa [#allocation3], 1 }
 0x19a   :  { %308 = vsyncpa [#allocation6], 1 }
 0x19b   :  { %309 = vsyncpa [#allocation4], 1 }

</bundles_post_ra>
